<compile_context>
chip_gen: v7x
topology: tpu7x:2x2x1
jax: 0.10.0
libtpu: 0.0.40
codegen_flags: <defaults>
</compile_context>

<pallas_src>
import functools

import numpy as np
import jax
import jax.numpy as jnp
from jax.experimental import pallas as pl
from jax.experimental.pallas import tpu as pltpu


# ---------------------------------------------------------------------------
# helpers
# ---------------------------------------------------------------------------

def _round_up(x, m):
    return x + (-x) % m


def _pick_tile(dim, pref, mult):
    """Tile size: multiple of `mult`, <= `pref`, minimizing pad waste."""
    r = _round_up(dim, mult)
    if r <= pref:
        return r
    best = mult
    for t in range(mult, pref + 1, mult):
        if r % t == 0:
            best = t
    if best * 4 >= pref:
        return best          # a divisor of the rounded dim -> zero pad waste
    return pref              # accept some padding to keep fat MXU tiles


def _pad_to(x, shape, value=0.0):
    pads = [(0, t - s) for s, t in zip(x.shape, shape)]
    if any(p for _, p in pads):
        x = jnp.pad(x, pads, constant_values=value)
    return x


# ---------------------------------------------------------------------------
# Pallas kernels
# ---------------------------------------------------------------------------

def _mm_bias_kernel(x_ref, w_ref, b_ref, o_ref, acc_ref, *, relu):
    """Tiled (tm,tk)@(tk,tn) on the MXU with an f32 accumulator; bias (+ReLU)
    is applied only at the last K step (epilogue off the reduction path)."""
    k = pl.program_id(2)

    @pl.when(k == 0)
    def _():
        acc_ref[...] = jnp.zeros_like(acc_ref)

    acc_ref[...] += jnp.dot(x_ref[...], w_ref[...],
                            preferred_element_type=jnp.float32)

    @pl.when(k == pl.num_programs(2) - 1)
    def _():
        y = acc_ref[...] + b_ref[...]
        if relu:
            y = jnp.maximum(y, 0.0)
        o_ref[...] = y.astype(o_ref.dtype)


def _mm_bias_relu_add_relu_kernel(x_ref, w_ref, b_ref, r_ref, o_ref, acc_ref):
    """conv3+bn3 -> relu -> (+ identity) -> relu, fused.  This matches the
    given PyTorch ResidualBlock.forward, which applies ReLU both before and
    after the residual add (unlike torchvision's Bottleneck)."""
    k = pl.program_id(2)

    @pl.when(k == 0)
    def _():
        acc_ref[...] = jnp.zeros_like(acc_ref)

    acc_ref[...] += jnp.dot(x_ref[...], w_ref[...],
                            preferred_element_type=jnp.float32)

    @pl.when(k == pl.num_programs(2) - 1)
    def _():
        y = jnp.maximum(acc_ref[...] + b_ref[...], 0.0)
        y = y + r_ref[...]
        o_ref[...] = jnp.maximum(y, 0.0).astype(o_ref.dtype)


def _maxpool9_kernel(x_ref, o_ref):
    # x_ref: (9, tm, C) block of the 9 shifted window views -> elementwise max.
    acc = x_ref[0]
    for t in range(1, 9):
        acc = jnp.maximum(acc, x_ref[t])
    o_ref[...] = acc


# ---------------------------------------------------------------------------
# Wrappers around pallas_call
# ---------------------------------------------------------------------------

def matmul_bias_act(x2d, w2d, bias, residual=None, relu=True,
                    tm_pref=256, tn_pref=256, tk_pref=512):
    """y = epilogue(x2d @ w2d + bias); bf16 MXU inputs, f32 accumulation.

    Tiled over (M, N, K) with double-buffered BlockSpec pipelining; M/N grid
    axes are "parallel" (megacore shardable), K is the "arbitrary" reduction.
    """
    M, K = x2d.shape
    K2, N = w2d.shape
    assert K == K2

    # bf16 min tile is (16, 128): keep sublane dims multiples of 16, lanes 128.
    tm = _pick_tile(M, tm_pref, 16)
    tn = _pick_tile(N, tn_pref, 128)
    tk = _pick_tile(K, tk_pref, 128)
    Mp, Np, Kp = _round_up(M, tm), _round_up(N, tn), _round_up(K, tk)
    gm, gn, gk = Mp // tm, Np // tn, Kp // tk

    xp = _pad_to(x2d, (Mp, Kp)).astype(jnp.bfloat16)
    wp = _pad_to(w2d, (Kp, Np)).astype(jnp.bfloat16)
    bp = _pad_to(bias.reshape(1, -1).astype(jnp.float32), (1, Np))

    in_specs = [
        pl.BlockSpec((tm, tk), lambda i, j, k: (i, k)),
        pl.BlockSpec((tk, tn), lambda i, j, k: (k, j)),
        pl.BlockSpec((1, tn), lambda i, j, k: (0, j)),
    ]
    args = [xp, wp, bp]
    bytes_accessed = Mp * Kp * 2 + Kp * Np * 2 + Np * 4 + Mp * Np * 4

    if residual is None:
        kernel = functools.partial(_mm_bias_kernel, relu=relu)
    else:
        rp = _pad_to(residual.astype(jnp.float32), (Mp, Np))
        in_specs.append(pl.BlockSpec((tm, tn), lambda i, j, k: (i, j)))
        args.append(rp)
        bytes_accessed += Mp * Np * 4
        kernel = _mm_bias_relu_add_relu_kernel

    y = pl.pallas_call(
        kernel,
        out_shape=jax.ShapeDtypeStruct((Mp, Np), jnp.float32),
        grid=(gm, gn, gk),
        in_specs=in_specs,
        out_specs=pl.BlockSpec((tm, tn), lambda i, j, k: (i, j)),
        scratch_shapes=[pltpu.VMEM((tm, tn), jnp.float32)],
        compiler_params=pltpu.CompilerParams(
            dimension_semantics=("parallel", "parallel", "arbitrary")),
        cost_estimate=pl.CostEstimate(
            flops=2 * Mp * Kp * Np,
            transcendentals=0,
            bytes_accessed=bytes_accessed),
    )(*args)
    return y[:M, :N]


def extract_patches(x, kh, kw, stride, pad):
    """im2col glue: NHWC -> (N, OH, OW, kh*kw*C) via static slicing only."""
    N, H, W, C = x.shape
    xp = jnp.pad(x, ((0, 0), (pad, pad), (pad, pad), (0, 0)))
    OH = (H + 2 * pad - kh) // stride + 1
    OW = (W + 2 * pad - kw) // stride + 1
    cols = []
    for i in range(kh):
        for j in range(kw):
            cols.append(xp[:, i:i + stride * OH:stride, j:j + stride * OW:stride, :])
    return jnp.concatenate(cols, axis=-1), OH, OW


def conv_bn_act(x, w_mat, bias, kh, kw, stride, pad, relu=True, residual=None):
    """Conv2d (+ folded eval-mode BatchNorm) (+ fused activation / residual)."""
    N, H, W, C = x.shape
    if kh == 1 and kw == 1 and pad == 0:
        # 1x1 conv: no duplication, just a (possibly strided) reshape.
        xs = x[:, ::stride, ::stride, :]
        OH, OW = xs.shape[1], xs.shape[2]
        patches = xs
        K = C
    else:
        patches, OH, OW = extract_patches(x, kh, kw, stride, pad)
        K = kh * kw * C
    M = N * OH * OW
    Cout = w_mat.shape[1]
    x2d = patches.reshape(M, K)
    r2d = None if residual is None else residual.reshape(M, Cout)
    y2d = matmul_bias_act(x2d, w_mat, bias, residual=r2d, relu=relu)
    return y2d.reshape(N, OH, OW, Cout)


def maxpool2d_3x3_s2_p1(x):
    N, H, W, C = x.shape
    k, stride, pad = 3, 2, 1
    NEG = -1e30
    xp = jnp.pad(x, ((0, 0), (pad, pad), (pad, pad), (0, 0)), constant_values=NEG)
    OH = (H + 2 * pad - k) // stride + 1
    OW = (W + 2 * pad - k) // stride + 1
    cols = []
    for i in range(k):
        for j in range(k):
            cols.append(xp[:, i:i + stride * OH:stride, j:j + stride * OW:stride, :])
    M = N * OH * OW
    stacked = jnp.stack(cols, axis=0).reshape(k * k, M, C)

    tm = _pick_tile(M, 512, 8)
    Mp = _round_up(M, tm)
    Cp = _round_up(C, 128)
    sp = _pad_to(stacked, (k * k, Mp, Cp), value=NEG)

    out = pl.pallas_call(
        _maxpool9_kernel,
        out_shape=jax.ShapeDtypeStruct((Mp, Cp), jnp.float32),
        grid=(Mp // tm,),
        in_specs=[pl.BlockSpec((k * k, tm, Cp), lambda i: (0, i, 0))],
        out_specs=pl.BlockSpec((tm, Cp), lambda i: (i, 0)),
        compiler_params=pltpu.CompilerParams(
            dimension_semantics=("parallel",)),
    )(sp)
    return out[:M, :C].reshape(N, OH, OW, C)


# ---------------------------------------------------------------------------
# Deterministic parameter construction (Conv + eval-mode BatchNorm folded)
# ---------------------------------------------------------------------------

_BN_EPS = 1e-5


def init_conv_bn(key, kh, kw, cin, cout):
    k1, k2, k3 = jax.random.split(key, 3)
    # He-style init keeps activations finite through 50 layers.
    w = jax.random.normal(k1, (kh, kw, cin, cout), jnp.float32) * np.sqrt(2.0 / (kh * kw * cin))
    conv_b = jnp.zeros((cout,), jnp.float32)
    gamma = 1.0 + 0.01 * jax.random.normal(k2, (cout,), jnp.float32)
    beta = 0.01 * jax.random.normal(k3, (cout,), jnp.float32)
    run_mean = jnp.zeros((cout,), jnp.float32)   # PyTorch BN init values
    run_var = jnp.ones((cout,), jnp.float32)
    # Fold eval-mode BN into the conv: y = (conv(x)+b - mean)*g/sqrt(v+eps) + beta
    s = gamma / jnp.sqrt(run_var + _BN_EPS)
    w_f = (w * s).reshape(kh * kw * cin, cout)
    b_f = (conv_b - run_mean) * s + beta
    return w_f, b_f


def init_resnet_params(key, layers, image_channels, num_classes):
    keys = iter(jax.random.split(key, 4 + 8 * sum(layers)))
    params = {}
    params["stem_w"], params["stem_b"] = init_conv_bn(next(keys), 7, 7, image_channels, 64)

    blocks = []
    in_channels = 64
    stage_cfg = [(layers[0], 64, 1), (layers[1], 128, 2), (layers[2], 256, 2), (layers[3], 512, 2)]
    for num_blocks, out_channels, stage_stride in stage_cfg:
        for b in range(num_blocks):
            stride = stage_stride if b == 0 else 1
            blk = {"stride": stride}
            blk["w1"], blk["b1"] = init_conv_bn(next(keys), 1, 1, in_channels, out_channels)
            blk["w2"], blk["b2"] = init_conv_bn(next(keys), 3, 3, out_channels, out_channels)
            blk["w3"], blk["b3"] = init_conv_bn(next(keys), 1, 1, out_channels, out_channels * 4)
            if b == 0 and (stride != 1 or in_channels != out_channels * 4):
                blk["wd"], blk["bd"] = init_conv_bn(next(keys), 1, 1, in_channels, out_channels * 4)
            else:
                blk["wd"], blk["bd"] = None, None
            blocks.append(blk)
            in_channels = out_channels * 4
    params["blocks"] = blocks

    kfc = next(keys)
    params["fc_w"] = jax.random.normal(kfc, (512 * 4, num_classes), jnp.float32) * np.sqrt(1.0 / (512 * 4))
    params["fc_b"] = jnp.zeros((num_classes,), jnp.float32)
    return params


# ---------------------------------------------------------------------------
# Forward pass
# ---------------------------------------------------------------------------

def residual_block_forward(x, p):
    identity = x
    out = conv_bn_act(x, p["w1"], p["b1"], 1, 1, 1, 0, relu=True)
    out = conv_bn_act(out, p["w2"], p["b2"], 3, 3, p["stride"], 1, relu=True)
    if p["wd"] is not None:
        identity = conv_bn_act(x, p["wd"], p["bd"], 1, 1, p["stride"], 0, relu=False)
    # conv3 + bn3 + relu, then += identity, then relu (fused in one kernel;
    # matches this module's forward, which ReLUs before AND after the add).
    out = conv_bn_act(out, p["w3"], p["b3"], 1, 1, 1, 0, relu=True, residual=identity)
    return out


def resnet_forward(params, x_nchw):
    x = jnp.transpose(x_nchw, (0, 2, 3, 1)).astype(jnp.float32)  # NCHW -> NHWC
    x = conv_bn_act(x, params["stem_w"], params["stem_b"], 7, 7, 2, 3, relu=True)
    x = maxpool2d_3x3_s2_p1(x)
    for blk in params["blocks"]:
        x = residual_block_forward(x, blk)
    # AdaptiveAvgPool2d((1,1)) + flatten: cheap glue reduction.
    x = jnp.mean(x, axis=(1, 2))                      # (N, 2048)
    y = matmul_bias_act(x, params["fc_w"], params["fc_b"], relu=False)
    return y                                          # (N, num_classes)


# ---------------------------------------------------------------------------
# Main
# ---------------------------------------------------------------------------

if __name__ == "__main__":
    key = jax.random.PRNGKey(0)
    k_in, k_par = jax.random.split(key)

    # ResNet-50 configuration: layers=[3,4,6,3]
    LAYERS = [3, 4, 6, 3]
    IMAGE_CHANNELS = 3
    NUM_CLASSES = 10

    params = init_resnet_params(k_par, LAYERS, IMAGE_CHANNELS, NUM_CLASSES)

    # Small deterministic input, PyTorch NCHW convention.
    x = jax.random.normal(k_in, (2, IMAGE_CHANNELS, 16, 16), jnp.float32)

    logits = resnet_forward(params, x)
    logits = jax.block_until_ready(logits)
    assert logits.shape == (2, NUM_CLASSES)
    assert bool(jnp.all(jnp.isfinite(logits)))
    print("KERNEL_OK")
</pallas_src>

<mosaic_0001>
module attributes {stable_mosaic.version = 11 : i64} {
  func.func @_mm_bias_kernel(%arg0: i32, %arg1: i32, %arg2: i32, %arg3: memref<128x256xbf16, #tpu.memory_space<vmem>>, %arg4: memref<256x128xbf16, #tpu.memory_space<vmem>>, %arg5: memref<1x128xf32, #tpu.memory_space<vmem>>, %arg6: memref<128x128xf32, #tpu.memory_space<vmem>>, %arg7: memref<128x128xf32, #tpu.memory_space<vmem>>) attributes {dimension_semantics = [#tpu.dimension_semantics<parallel>, #tpu.dimension_semantics<parallel>, #tpu.dimension_semantics<arbitrary>], iteration_bounds = array<i64: 1, 1, 1>, scalar_prefetch = 0 : i64, scratch_operands = 1 : i64, tpu.core_type = #tpu.core_type<tc>, window_params = [{transform_indices = @transform_0, window_bounds = array<i64: 128, 256>}, {transform_indices = @transform_1, window_bounds = array<i64: 256, 128>}, {transform_indices = @transform_2, window_bounds = array<i64: 1, 128>}, {transform_indices = @transform_3, window_bounds = array<i64: 128, 128>}]} {
    %c0_i32 = arith.constant 0 : i32
    %0 = arith.cmpi eq, %arg2, %c0_i32 : i32
    %1 = arith.extui %0 : i1 to i32
    %c0_i32_0 = arith.constant 0 : i32
    %2 = arith.cmpi ne, %1, %c0_i32_0 : i32
    scf.if %2 {
      %cst_10 = arith.constant 0.000000e+00 : f32
      %12 = vector.broadcast %cst_10 : f32 to vector<128x128xf32>
      %c0_11 = arith.constant 0 : index
      %c0_12 = arith.constant 0 : index
      %13 = vector.load %arg7[%c0_11, %c0_12] : memref<128x128xf32, #tpu.memory_space<vmem>>, vector<128x128xf32>
      tpu.vector_store %arg7[%c0_11, %c0_12], %12 {strides = array<i32>} : memref<128x128xf32, #tpu.memory_space<vmem>>, vector<128x128xf32>,
    } else {
    }
    %c0 = arith.constant 0 : index
    %c0_1 = arith.constant 0 : index
    %3 = vector.load %arg7[%c0, %c0_1] : memref<128x128xf32, #tpu.memory_space<vmem>>, vector<128x128xf32>
    %c0_2 = arith.constant 0 : index
    %c0_3 = arith.constant 0 : index
    %4 = vector.load %arg3[%c0_2, %c0_3] : memref<128x256xbf16, #tpu.memory_space<vmem>>, vector<128x256xbf16>
    %c0_4 = arith.constant 0 : index
    %c0_5 = arith.constant 0 : index
    %5 = vector.load %arg4[%c0_4, %c0_5] : memref<256x128xbf16, #tpu.memory_space<vmem>>, vector<256x128xbf16>
    %cst = arith.constant dense<0.000000e+00> : vector<128x128xf32>
    %6 = tpu.matmul %4, %5, %cst {dimension_numbers = #tpu.dot_dimension_numbers<[1], [0], [0], [1], [0, 0, 1, 1], [], []>} : vector<128x256xbf16>, vector<256x128xbf16>, vector<128x128xf32> -> vector<128x128xf32>
    %7 = arith.addf %3, %6 : vector<128x128xf32>
    %c0_6 = arith.constant 0 : index
    %c0_7 = arith.constant 0 : index
    %8 = vector.load %arg7[%c0_6, %c0_7] : memref<128x128xf32, #tpu.memory_space<vmem>>, vector<128x128xf32>
    tpu.vector_store %arg7[%c0_6, %c0_7], %7 {strides = array<i32>} : memref<128x128xf32, #tpu.memory_space<vmem>>, vector<128x128xf32>,
    %c0_i32_8 = arith.constant 0 : i32
    %9 = arith.cmpi eq, %arg2, %c0_i32_8 : i32
    %10 = arith.extui %9 : i1 to i32
    %c0_i32_9 = arith.constant 0 : i32
    %11 = arith.cmpi ne, %10, %c0_i32_9 : i32
    scf.if %11 {
      %c0_10 = arith.constant 0 : index
      %c0_11 = arith.constant 0 : index
      %12 = vector.load %arg7[%c0_10, %c0_11] : memref<128x128xf32, #tpu.memory_space<vmem>>, vector<128x128xf32>
      %c0_12 = arith.constant 0 : index
      %c0_13 = arith.constant 0 : index
      %13 = vector.load %arg5[%c0_12, %c0_13] : memref<1x128xf32, #tpu.memory_space<vmem>>, vector<1x128xf32>
      %14 = vector.broadcast %13 : vector<1x128xf32> to vector<128x128xf32>
      %15 = arith.addf %12, %14 : vector<128x128xf32>
      %cst_14 = arith.constant 0.000000e+00 : f32
      %16 = vector.broadcast %cst_14 : f32 to vector<128x128xf32>
      %17 = arith.maximumf %15, %16 : vector<128x128xf32>
      %c0_15 = arith.constant 0 : index
      %c0_16 = arith.constant 0 : index
      %18 = vector.load %arg6[%c0_15, %c0_16] : memref<128x128xf32, #tpu.memory_space<vmem>>, vector<128x128xf32>
      tpu.vector_store %arg6[%c0_15, %c0_16], %17 {strides = array<i32>} : memref<128x128xf32, #tpu.memory_space<vmem>>, vector<128x128xf32>,
    } else {
    }
    return
  }
  func.func @transform_0(%arg0: i32, %arg1: i32, %arg2: i32) -> (i32, i32) {
    %c0_i32 = arith.constant 0 : i32
    return %arg0, %arg2 : i32, i32
  }
  func.func @transform_1(%arg0: i32, %arg1: i32, %arg2: i32) -> (i32, i32) {
    %c0_i32 = arith.constant 0 : i32
    return %arg2, %arg1 : i32, i32
  }
  func.func @transform_2(%arg0: i32, %arg1: i32, %arg2: i32) -> (i32, i32) {
    %c0_i32 = arith.constant 0 : i32
    %c0_i32_0 = arith.constant 0 : i32
    return %c0_i32, %arg1 : i32, i32
  }
  func.func @transform_3(%arg0: i32, %arg1: i32, %arg2: i32) -> (i32, i32) {
    %c0_i32 = arith.constant 0 : i32
    return %arg0, %arg1 : i32, i32
  }
}

</mosaic_0001>

<bundles_post_ra>
// kernel: tpu_custom_call.1
= control target key start
LH: loop header
LB: loop body
LE: loop exit
PB: predicated region body
PF: predicated region fallthrough
CT: control target
= control target key end

     0   :  { %8 = vsyncpa [#allocation4], 0  ;;  %s847_s0 = inlined_call_operand.hbm [shape: bf16[128,256], index: 0, kind: input, shape index: {}]   ;;  %s848_s1 = inlined_call_operand.hbm [shape: bf16[256,128], index: 1, kind: input, shape index: {}]   ;;  %s849_s2 = inlined_call_operand.vmem [shape: f32[1,128], index: 2, kind: input, shape index: {}]   ;;  %s850_s3 = inlined_call_operand.hbm [shape: f32[128,128], index: 3, kind: output, shape index: {}]  }
   0x1   :  { %9 = vsyncpa [#allocation7], 0 }
   0x2   :  { %10 = vsyncpa [#allocation5], 0  ;;  %s757_s12 = smov [#allocation3]   ;;  %s685_s16 = scalar_lea.hbm %s847_s0, 2048 }
   0x3   :  { %s16_s13 = sshll.u32 %s757_s12, 4  ;;  %p686_p0 = scmp.ne.s32.totalorder %s847_s0, %s685_s16  ;;  %s17_s13 = int_to_ptr.vmem [resolvable:$true] %s16_s13 }
   0x4   :  { %p689_p1 = scmp.lt.u32.totalorder %s685_s16, %s847_s0 }
   0x6   :  { %p691_p2 = pnand %p689_p1, %p686_p0 }
   0x8   :  { %694 = shalt.err (!%p691_p2)
}
   0x9   :  { %s695_s21 = scalar_lea.vmem %s17_s13, 2048  ;;  %p700_p4 = scmp.lt.s32.totalorder %s17_s13, %s17_s13 }
   0xa   :  { %p696_p3 = scmp.ne.s32.totalorder %s17_s13, %s695_s21  ;;  %p701_p5 = scmp.lt.s32.totalorder %s695_s21, %s695_s21 }
   0xc   :  { %p702_p6 = por %p701_p5, %p700_p4 }
   0xe   :  { %p703_p7 = pnand %p702_p6, %p696_p3 }
  0x10   :  { %706 = shalt.err (!%p703_p7)
}
  0x11   :  { %s758_s22 = smov 128   ;;  %s759_s23 = smov 8  }
  0x12   :  { %22 = dma.hbm_to_vmem [thread:$0]  %s847_s0, 2048, %s17_s13, [#allocation4], %s758_s22, %s758_s22, %s759_s23  }
  0x13   :  { %s760_s26 = smov [#allocation6]   ;;  %s707_s30 = scalar_lea.hbm %s848_s1, 2048 }
  0x14   :  { %s28_s27 = sshll.u32 %s760_s26, 4  ;;  %p708_p8 = scmp.ne.s32.totalorder %s848_s1, %s707_s30  ;;  %s29_s27 = int_to_ptr.vmem [resolvable:$true] %s28_s27 }
  0x15   :  { %p711_p9 = scmp.lt.u32.totalorder %s707_s30, %s848_s1 }
  0x17   :  { %p713_p10 = pnand %p711_p9, %p708_p8 }
  0x19   :  { %716 = shalt.err (!%p713_p10)
}
  0x1a   :  { %s717_s8 = scalar_lea.vmem %s29_s27, 2048  ;;  %p722_p12 = scmp.lt.s32.totalorder %s29_s27, %s29_s27 }
  0x1b   :  { %p718_p11 = scmp.ne.s32.totalorder %s29_s27, %s717_s8  ;;  %p723_p13 = scmp.lt.s32.totalorder %s717_s8, %s717_s8 }
  0x1d   :  { %p724_p0 = por %p723_p13, %p722_p12 }
  0x1f   :  { %p725_p1 = pnand %p724_p0, %p718_p11 }
  0x21   :  { %728 = shalt.err (!%p725_p1)
}
  0x22   :  { %s761_s0 = smov 64   ;;  %s762_s9 = smov 4  }
  0x23   :  { %34 = dma.hbm_to_vmem [thread:$0]  %s848_s1, 2048, %s29_s27, [#allocation7], %s761_s0, %s761_s0, %s762_s9  }
  0x24   :  { %751 = dma.done.wait [#allocation4], 2048  }
  0x25   :  { %752 = vsyncadd [#allocation4], 4294965248 }
  0x26   :  { %753 = dma.done.wait [#allocation7], 2048  }
  0x27   :  { %754 = vsyncadd [#allocation7], 4294965248  ;;  %v645_v0 = vld [vmem:[#allocation6 + $0x40] sm:$0xff]   ;;  %v647_v2 = vld [vmem:[#allocation6 + $0x48] sm:$0xff]  }
  0x28   :  { %v646_v1 = vld [vmem:[#allocation6] sm:$0xff]   ;;  %558 = vmatprep.subr.bf16.mxu0 %v645_v0  ;;  %622 = vmatprep.subr.bf16.mxu1 %v645_v0  ;;  %v648_v3 = vld [vmem:[#allocation6 + $0x8] sm:$0xff]   ;;  %v649_v4 = vld [vmem:[#allocation6 + $0x50] sm:$0xff]  }
  0x29   :  { %559 = vmatpush3.bf16.msra.mxu0 %v646_v1  ;;  %630 = vmatpush3.bf16.msra.mxu1 %v646_v1  ;;  %v650_v5 = vld [vmem:[#allocation6 + $0x10] sm:$0xff]   ;;  %v651_v6 = vld [vmem:[#allocation6 + $0x58] sm:$0xff]   ;;  %v653_v8 = vld [vmem:[#allocation6 + $0x60] sm:$0xff]  }
  0x2a   :  { %560 = vmatprep.subr.bf16.mxu0 %v647_v2  ;;  %623 = vmatprep.subr.bf16.mxu1 %v647_v2  ;;  %v652_v7 = vld [vmem:[#allocation6 + $0x18] sm:$0xff]   ;;  %v654_v9 = vld [vmem:[#allocation6 + $0x20] sm:$0xff]   ;;  %v655_v10 = vld [vmem:[#allocation6 + $0x68] sm:$0xff]  }
  0x2b   :  { %v663_v11 = vld [vmem:[#allocation3 + $0x4] ss:$8 sps:$4 sm:$0xff]   ;;  %v657_v14 = vld [vmem:[#allocation6 + $0x70] sm:$0xff]   ;;  %v659_v16 = vld [vmem:[#allocation6 + $0x78] sm:$0xff]  }
  0x2c   :  { %v666_v12 = vld [vmem:[#allocation3 + $0x44] ss:$8 sps:$4 sm:$0xff]   ;;  %336 = vmatprep.mubr.bf16.mxu0 %v663_v11  ;;  %v658_v15 = vld [vmem:[#allocation6 + $0x30] sm:$0xff]   ;;  %v660_v17 = vld [vmem:[#allocation6 + $0x38] sm:$0xff]  }
  0x2d   :  { %561 = vmatpush3.bf16.msra.mxu0 %v648_v3  ;;  %631 = vmatpush3.bf16.msra.mxu1 %v648_v3  ;;  %v656_v13 = vld [vmem:[#allocation6 + $0x28] sm:$0xff]   ;;  %v667_v20 = vld [vmem:[#allocation3 + $0x14] ss:$8 sps:$4 sm:$0xff]   ;;  %v671_v22 = vld [vmem:[#allocation3 + $0x10] ss:$8 sps:$4 sm:$0xff]  }
  0x2e   :  { %562 = vmatprep.subr.bf16.mxu0 %v649_v4  ;;  %624 = vmatprep.subr.bf16.mxu1 %v649_v4  ;;  %v661_v18 = vld [vmem:[#allocation3] ss:$8 sps:$4 sm:$0xff]   ;;  %v669_v21 = vld [vmem:[#allocation3 + $0x54] ss:$8 sps:$4 sm:$0xff]   ;;  %v672_v23 = vld [vmem:[#allocation3 + $0x50] ss:$8 sps:$4 sm:$0xff]  }
  0x2f   :  { %368 = vmatprep.mubr.bf16.mxu1 %v666_v12  ;;  %v664_v19 = vld [vmem:[#allocation3 + $0x40] ss:$8 sps:$4 sm:$0xff]   ;;  %v673_v24 = vld [vmem:[#allocation3 + $0x24] ss:$8 sps:$4 sm:$0xff]   ;;  %v679_v28 = vld [vmem:[#allocation3 + $0x34] ss:$8 sps:$4 sm:$0xff]  }
  0x30   :  { %v675_v25 = vld [vmem:[#allocation3 + $0x64] ss:$8 sps:$4 sm:$0xff]   ;;  %v677_v26 = vld [vmem:[#allocation3 + $0x20] ss:$8 sps:$4 sm:$0xff]   ;;  %v681_v29 = vld [vmem:[#allocation3 + $0x74] ss:$8 sps:$4 sm:$0xff]  }
  0x31   :  { %563 = vmatpush3.bf16.msra.mxu0 %v650_v5  ;;  %632 = vmatpush3.bf16.msra.mxu1 %v650_v5  ;;  %v678_v27 = vld [vmem:[#allocation3 + $0x60] ss:$8 sps:$4 sm:$0xff]   ;;  %v683_v30 = vld [vmem:[#allocation3 + $0x30] ss:$8 sps:$4 sm:$0xff]  }
  0x32   :  { %564 = vmatprep.subr.bf16.mxu0 %v651_v6  ;;  %625 = vmatprep.subr.bf16.mxu1 %v651_v6  ;;  %v684_v31 = vld [vmem:[#allocation3 + $0x70] ss:$8 sps:$4 sm:$0xff]   ;;  %v814_v35 = vld [vmem:[%s849_s2] ss:$0 sm:$0xff]  ;;  %s763_s2 = smov [#allocation8]  }
  0x33   :  { %s512_s13 = sshll.u32 %s763_s2, 4  ;;  %s513_s13 = int_to_ptr.vmem [resolvable:$true] %s512_s13 }
  0x34   :  { %s729_s14 = scalar_lea.vmem %s513_s13, 2048  ;;  %p734_p3 = scmp.lt.s32.totalorder %s513_s13, %s513_s13 }
  0x35   :  { %565 = vmatpush3.bf16.msra.mxu0 %v652_v7  ;;  %633 = vmatpush3.bf16.msra.mxu1 %v652_v7  ;;  %p730_p2 = scmp.ne.s32.totalorder %s513_s13, %s729_s14  ;;  %p735_p4 = scmp.lt.s32.totalorder %s729_s14, %s729_s14 }
  0x36   :  { %566 = vmatprep.subr.bf16.mxu0 %v653_v8  ;;  %626 = vmatprep.subr.bf16.mxu1 %v653_v8 }
  0x37   :  { %p736_p5 = por %p735_p4, %p734_p3 }
  0x39   :  { %567 = vmatpush3.bf16.msra.mxu0 %v654_v9  ;;  %634 = vmatpush3.bf16.msra.mxu1 %v654_v9  ;;  %p737_p6 = pnand %p736_p5, %p730_p2 }
  0x3a   :  { %568 = vmatprep.subr.bf16.mxu0 %v655_v10  ;;  %627 = vmatprep.subr.bf16.mxu1 %v655_v10 }
  0x3d   :  { %569 = vmatpush3.bf16.msra.mxu0 %v656_v13  ;;  %635 = vmatpush3.bf16.msra.mxu1 %v656_v13 }
  0x3e   :  { %570 = vmatprep.subr.bf16.mxu0 %v657_v14  ;;  %628 = vmatprep.subr.bf16.mxu1 %v657_v14 }
  0x41   :  { %571 = vmatpush3.bf16.msra.mxu0 %v658_v15  ;;  %636 = vmatpush3.bf16.msra.mxu1 %v658_v15 }
  0x42   :  { %572 = vmatprep.subr.bf16.mxu0 %v659_v16  ;;  %629 = vmatprep.subr.bf16.mxu1 %v659_v16 }
  0x45   :  { %573 = vmatpush3.bf16.msra.mxu0 %v660_v17  ;;  %637 = vmatpush3.bf16.msra.mxu1 %v660_v17 }
  0x48   :  { %337 = vmatmul.mubr.bf16.vlgmr.msra.gmra.mrb[0].mxu0 %v661_v18  ;;  %369 = vmatmul.mubr.bf16.vlgmr.msra.gmra.mrb[0].mxu1 %v664_v19 }
  0x49   :  { %344 = vmatprep.mubr.bf16.mxu0 %v667_v20  ;;  %376 = vmatprep.mubr.bf16.mxu1 %v669_v21 }
  0x50   :  { %345 = vmatmul.mubr.bf16.gmra.mrb[4].mxu0 %v671_v22  ;;  %377 = vmatmul.mubr.bf16.gmra.mrb[4].mxu1 %v672_v23 }
  0x51   :  { %352 = vmatprep.mubr.bf16.mxu0 %v673_v24  ;;  %384 = vmatprep.mubr.bf16.mxu1 %v675_v25 }
  0x58   :  { %353 = vmatmul.mubr.bf16.gmra.mrb[8].mxu0 %v677_v26  ;;  %385 = vmatmul.mubr.bf16.gmra.mrb[8].mxu1 %v678_v27 }
  0x59   :  { %360 = vmatprep.mubr.bf16.mxu0 %v679_v28  ;;  %392 = vmatprep.mubr.bf16.mxu1 %v681_v29 }
  0x60   :  { %361 = vmatmul.mubr.bf16.gmra.mrb[12].mxu0 %v683_v30  ;;  %393 = vmatmul.mubr.bf16.gmra.mrb[12].mxu1 %v684_v31 }
 0x11b   :  { %v574_v32 = vpop.f32.mrb[0].mxu0  ;;  %v598_v33 = vpop.f32.mrb[0].mxu1 }
 0x11c   :  { %v575_v34 = vpop.f32.mrb[1].mxu0  ;;  %v599_v36 = vpop.f32.mrb[1].mxu1 }
 0x11d   :  { %v576_v37 = vadd.f32 %v575_v34, %v574_v32  ;;  %v600_v38 = vadd.f32 %v599_v36, %v598_v33  ;;  %v577_v39 = vpop.f32.mrb[2].mxu0  ;;  %v601_v40 = vpop.f32.mrb[2].mxu1 }
 0x11e   :  { %v578_v41 = vpop.f32.mrb[3].mxu0  ;;  %v602_v42 = vpop.f32.mrb[3].mxu1 }
 0x11f   :  { %v459_v43 = vadd.f32 %v576_v37, %v814_v35  ;;  %v467_v44 = vadd.f32 %v600_v38, %v814_v35  ;;  %v579_v45 = vadd.f32 %v578_v41, %v577_v39  ;;  %v603_v46 = vadd.f32 %v602_v42, %v601_v40 }
 0x121   :  { %v475_v47 = vmax.f32 %v459_v43, 0.0  ;;  %v483_v48 = vmax.f32 %v467_v44, 0.0  ;;  %v460_v49 = vadd.f32 %v579_v45, %v814_v35  ;;  %v468_v50 = vadd.f32 %v603_v46, %v814_v35 }
 0x123   :  { %491 = vst [vmem:[#allocation8] sm:$0xff] %v475_v47  ;;  %499 = vst [vmem:[#allocation8 + $0x40] sm:$0xff] %v483_v48  ;;  %v476_v51 = vmax.f32 %v460_v49, 0.0  ;;  %v484_v52 = vmax.f32 %v468_v50, 0.0  ;;  %v580_v53 = vpop.f32.mrb[4].mxu0  ;;  %v604_v54 = vpop.f32.mrb[4].mxu1 }
 0x124   :  { %v581_v55 = vpop.f32.mrb[5].mxu0  ;;  %v605_v56 = vpop.f32.mrb[5].mxu1 }
 0x125   :  { %492 = vst [vmem:[#allocation8 + $0x8] sm:$0xff] %v476_v51  ;;  %500 = vst [vmem:[#allocation8 + $0x48] sm:$0xff] %v484_v52  ;;  %v582_v57 = vadd.f32 %v581_v55, %v580_v53  ;;  %v606_v58 = vadd.f32 %v605_v56, %v604_v54  ;;  %v583_v59 = vpop.f32.mrb[6].mxu0  ;;  %v607_v60 = vpop.f32.mrb[6].mxu1 }
 0x126   :  { %v584_v61 = vpop.f32.mrb[7].mxu0  ;;  %v608_v62 = vpop.f32.mrb[7].mxu1 }
 0x127   :  { %v461_v63 = vadd.f32 %v582_v57, %v814_v35  ;;  %v469_v0 = vadd.f32 %v606_v58, %v814_v35  ;;  %v585_v1 = vadd.f32 %v584_v61, %v583_v59  ;;  %v609_v2 = vadd.f32 %v608_v62, %v607_v60 }
 0x129   :  { %v477_v3 = vmax.f32 %v461_v63, 0.0  ;;  %v485_v4 = vmax.f32 %v469_v0, 0.0  ;;  %v462_v5 = vadd.f32 %v585_v1, %v814_v35  ;;  %v470_v6 = vadd.f32 %v609_v2, %v814_v35 }
 0x12b   :  { %493 = vst [vmem:[#allocation8 + $0x10] sm:$0xff] %v477_v3  ;;  %501 = vst [vmem:[#allocation8 + $0x50] sm:$0xff] %v485_v4  ;;  %v478_v7 = vmax.f32 %v462_v5, 0.0  ;;  %v486_v8 = vmax.f32 %v470_v6, 0.0  ;;  %v586_v9 = vpop.f32.mrb[8].mxu0  ;;  %v610_v10 = vpop.f32.mrb[8].mxu1 }
 0x12c   :  { %v587_v11 = vpop.f32.mrb[9].mxu0  ;;  %v611_v12 = vpop.f32.mrb[9].mxu1 }
 0x12d   :  { %494 = vst [vmem:[#allocation8 + $0x18] sm:$0xff] %v478_v7  ;;  %502 = vst [vmem:[#allocation8 + $0x58] sm:$0xff] %v486_v8  ;;  %v588_v13 = vadd.f32 %v587_v11, %v586_v9  ;;  %v612_v14 = vadd.f32 %v611_v12, %v610_v10  ;;  %v589_v15 = vpop.f32.mrb[10].mxu0  ;;  %v613_v16 = vpop.f32.mrb[10].mxu1 }
 0x12e   :  { %v590_v17 = vpop.f32.mrb[11].mxu0  ;;  %v614_v18 = vpop.f32.mrb[11].mxu1 }
 0x12f   :  { %v463_v19 = vadd.f32 %v588_v13, %v814_v35  ;;  %v471_v20 = vadd.f32 %v612_v14, %v814_v35  ;;  %v591_v21 = vadd.f32 %v590_v17, %v589_v15  ;;  %v615_v22 = vadd.f32 %v614_v18, %v613_v16 }
 0x131   :  { %v479_v23 = vmax.f32 %v463_v19, 0.0  ;;  %v487_v24 = vmax.f32 %v471_v20, 0.0  ;;  %v464_v25 = vadd.f32 %v591_v21, %v814_v35  ;;  %v472_v26 = vadd.f32 %v615_v22, %v814_v35 }
 0x133   :  { %495 = vst [vmem:[#allocation8 + $0x20] sm:$0xff] %v479_v23  ;;  %503 = vst [vmem:[#allocation8 + $0x60] sm:$0xff] %v487_v24  ;;  %v480_v27 = vmax.f32 %v464_v25, 0.0  ;;  %v488_v28 = vmax.f32 %v472_v26, 0.0  ;;  %v592_v29 = vpop.f32.mrb[12].mxu0  ;;  %v616_v30 = vpop.f32.mrb[12].mxu1 }
 0x134   :  { %v593_v31 = vpop.f32.mrb[13].mxu0  ;;  %v617_v32 = vpop.f32.mrb[13].mxu1 }
 0x135   :  { %496 = vst [vmem:[#allocation8 + $0x28] sm:$0xff] %v480_v27  ;;  %504 = vst [vmem:[#allocation8 + $0x68] sm:$0xff] %v488_v28  ;;  %v594_v33 = vadd.f32 %v593_v31, %v592_v29  ;;  %v618_v34 = vadd.f32 %v617_v32, %v616_v30  ;;  %v595_v36 = vpop.f32.mrb[14].mxu0  ;;  %v619_v37 = vpop.f32.mrb[14].mxu1 }
 0x136   :  { %v596_v38 = vpop.f32.mrb[15].mxu0  ;;  %v620_v39 = vpop.f32.mrb[15].mxu1 }
 0x137   :  { %v465_v40 = vadd.f32 %v594_v33, %v814_v35  ;;  %v473_v41 = vadd.f32 %v618_v34, %v814_v35  ;;  %v597_v42 = vadd.f32 %v596_v38, %v595_v36  ;;  %v621_v43 = vadd.f32 %v620_v39, %v619_v37 }
 0x139   :  { %v481_v44 = vmax.f32 %v465_v40, 0.0  ;;  %v489_v45 = vmax.f32 %v473_v41, 0.0  ;;  %v466_v46 = vadd.f32 %v597_v42, %v814_v35  ;;  %v474_v47 = vadd.f32 %v621_v43, %v814_v35 }
 0x13b   :  { %497 = vst [vmem:[#allocation8 + $0x30] sm:$0xff] %v481_v44  ;;  %505 = vst [vmem:[#allocation8 + $0x70] sm:$0xff] %v489_v45  ;;  %v482_v48 = vmax.f32 %v466_v46, 0.0  ;;  %v490_v49 = vmax.f32 %v474_v47, 0.0 }
 0x13d   :  { %498 = vst [vmem:[#allocation8 + $0x38] sm:$0xff] %v482_v48  ;;  %506 = vst [vmem:[#allocation8 + $0x78] sm:$0xff] %v490_v49 }
 0x13e   :  { %740 = shalt.err (!%p737_p6)
}
 0x13f   :  { %s741_s17 = scalar_lea.hbm %s850_s3, 2048 }
 0x140   :  { %p742_p7 = scmp.ne.s32.totalorder %s850_s3, %s741_s17  ;;  %p745_p8 = scmp.lt.u32.totalorder %s741_s17, %s850_s3 }
 0x142   :  { %p747_p9 = pnand %p745_p8, %p742_p7 }
 0x144   :  { %750 = shalt.err (!%p747_p9)
}
 0x145   :  { %518 = dma.vmem_to_hbm [thread:$0]  %s513_s13, 2048, %s850_s3, [#allocation5], %s758_s22, %s758_s22, %s759_s23  }
 0x146   :  { %755 = dma.done.wait [#allocation5], 2048  }
 0x147   :  { %756 = vsyncadd [#allocation5], 4294965248 }
 0x148   :  { %522 = vsyncpa [#allocation4], 1 }
 0x149   :  { %523 = vsyncpa [#allocation7], 1 }
 0x14a   :  { %524 = vsyncpa [#allocation5], 1 }

</bundles_post_ra>
